<compile_context>
chip_gen: v6e
topology: v6e:2x2x1
jax: 0.10.0
libtpu: 0.0.40
codegen_flags: <defaults>
</compile_context>

<pallas_src>
import math

import jax
import jax.numpy as jnp
from jax.experimental import pallas as pl
from jax.experimental.pallas import tpu as pltpu


def _scale_offset_kernel(x_ref, gamma_ref, beta_ref, o_ref):
    # x_ref: (TILE_ROWS, TILE_K); gamma_ref/beta_ref: (1, TILE_K) f32
    # (broadcast over sublanes). Compute in f32, cast to output dtype.
    x = x_ref[...].astype(jnp.float32)
    o_ref[...] = (x * gamma_ref[...] + beta_ref[...]).astype(o_ref.dtype)


def _round_down(a, b):
    return (a // b) * b


# VMEM sizing: stay within v7x's 64 MiB physical VMEM (smallest generation),
# leaving headroom for Mosaic internal scratch. v5e/v6e have 128 MiB physical
# so this limit is legal everywhere.
_VMEM_LIMIT_BYTES = 48 * 1024 * 1024
_VMEM_BLOCK_BUDGET = 40 * 1024 * 1024
_K_TILE_CAP = 2048
_MIN_PALLAS_BYTES = 256 * 1024


def scale_offset(x, gamma, beta, *, tile_rows=None, tile_k=None,
                 min_pallas_bytes=_MIN_PALLAS_BYTES):
    """Apply y = x * gamma + beta along the last dim (ScaleOffset forward)."""
    orig_shape = x.shape
    k = orig_shape[-1]
    assert gamma.shape == (k,) and beta.shape == (k,)

    # Keep the affine parameters in f32 inside the kernel.
    gamma_f32 = gamma.astype(jnp.float32)
    beta_f32 = beta.astype(jnp.float32)

    itemsize = jnp.dtype(x.dtype).itemsize
    rows = 1
    for d in orig_shape[:-1]:
        rows *= d

    # Tiny inputs: pallas_call launch + single-block DMA overhead dominates;
    # a fused XLA elementwise op is strictly faster and fuses with neighbors.
    if rows * k * itemsize < min_pallas_bytes:
        return (x.astype(jnp.float32) * gamma_f32 + beta_f32).astype(x.dtype)

    x2d = x.reshape(rows, k)

    # --- Lane-dense folding (generalized): whenever the last dim is not a
    # multiple of 128, fold `fold = 128 // gcd(k, 128)` rows into lanes so the
    # kernel's last dim becomes a 128-multiple (unmasked vst, not vst.msk).
    # gamma/beta are tiled by exactly the same fold so lanes keep their params.
    rows2, k2 = rows, k
    if k % 128 != 0:
        fold = 128 // math.gcd(k, 128)
        if fold > 1 and rows % fold == 0:
            rows2 = rows // fold
            k2 = k * fold
            x2d = x2d.reshape(rows2, k2)
            gamma_f32 = jnp.tile(gamma_f32, fold)
            beta_f32 = jnp.tile(beta_f32, fold)

    gamma2d = gamma_f32.reshape(1, k2)
    beta2d = beta_f32.reshape(1, k2)

    # Sublane packing: 8 rows/vreg for f32, 16 for bf16, 32 for int8/fp8.
    pack = max(8, 32 // itemsize)

    # --- K tiling: keep the full last dim when small; otherwise prefer the
    # largest 128-multiple *divisor* of k2 up to the cap (no ragged/padded K
    # block), falling back to the cap with a cdiv grid.
    if tile_k is None:
        if k2 <= _K_TILE_CAP:
            tile_k = k2
        else:
            tile_k = _K_TILE_CAP
            if k2 % 128 == 0:
                d = 128
                while d <= _K_TILE_CAP:
                    if k2 % d == 0:
                        tile_k = d
                    d += 128
    k_blocks = pl.cdiv(k2, tile_k)

    # --- Row tiling: largest row block keeping total VMEM use (double-buffered
    # x + out blocks plus the in-kernel f32 upcast temporary) inside budget.
    # bytes/elem ~= 4*itemsize (2 x-buffers + 2 out-buffers) + 8 (f32 temps).
    if tile_rows is None:
        bytes_per_elem = 4 * itemsize + 8
        max_block_elems = _VMEM_BLOCK_BUDGET // bytes_per_elem
        tr = max(1, max_block_elems // tile_k)
        tr = max(pack, _round_down(tr, pack))
        tile_rows = rows2 if rows2 <= tr else tr
        # v7x megacore: if the whole problem would be a single block, split the
        # row axis so both TensorCores get work.
        if k_blocks == 1 and tile_rows == rows2 and rows2 >= 2 * pack:
            tile_rows = max(pack, _round_down(-(-rows2 // 2), pack))

    row_blocks = pl.cdiv(rows2, tile_rows)

    # Grid order (K outer, rows inner): gamma/beta block index is constant
    # across the inner loop, so their small DMAs are not re-issued per row
    # block. Both axes are "parallel" for megacore sharding.
    grid = (k_blocks, row_blocks)

    out = pl.pallas_call(
        _scale_offset_kernel,
        out_shape=jax.ShapeDtypeStruct((rows2, k2), x.dtype),
        grid_spec=pltpu.PrefetchScalarGridSpec(
            num_scalar_prefetch=0,
            grid=grid,
            in_specs=[
                pl.BlockSpec((tile_rows, tile_k), lambda kb, rb: (rb, kb)),
                pl.BlockSpec((1, tile_k), lambda kb, rb: (0, kb)),
                pl.BlockSpec((1, tile_k), lambda kb, rb: (0, kb)),
            ],
            out_specs=pl.BlockSpec((tile_rows, tile_k), lambda kb, rb: (rb, kb)),
        ),
        compiler_params=pltpu.CompilerParams(
            dimension_semantics=("parallel", "parallel"),
            vmem_limit_bytes=_VMEM_LIMIT_BYTES,
        ),
    )(x2d, gamma2d, beta2d)

    return out.reshape(orig_shape)


if __name__ == "__main__":
    key = jax.random.PRNGKey(0)
    kx, kg, kb, kx2, kx3, kx4, kx5 = jax.random.split(key, 7)

    # Primary small shape consistent with the module: batch=2, seq=8, key_size=32.
    # min_pallas_bytes=0 forces the Pallas kernel even at this tiny size.
    batch, seq, key_size = 2, 8, 32
    x = jax.random.normal(kx, (batch, seq, key_size), dtype=jnp.float32)
    gamma = jnp.ones((key_size,), jnp.float32) + 0.1 * jax.random.normal(
        kg, (key_size,), dtype=jnp.float32
    )
    beta = jnp.zeros((key_size,), jnp.float32) + 0.1 * jax.random.normal(
        kb, (key_size,), dtype=jnp.float32
    )
    y = jax.block_until_ready(scale_offset(x, gamma, beta, min_pallas_bytes=0))
    y_ref = x * gamma + beta
    assert y.shape == x.shape and y.dtype == x.dtype
    assert jnp.allclose(y, y_ref, atol=1e-6, rtol=1e-6)

    # Ragged row count + key_size that doesn't fold (15 rows, k=96, fold=4):
    # exercises the full-dim-block / masked-store fallback path.
    x2 = jax.random.normal(kx2, (3, 5, 96), dtype=jnp.float32)
    g2 = 1.0 + 0.05 * jax.random.normal(kg, (96,), dtype=jnp.float32)
    b2 = 0.05 * jax.random.normal(kb, (96,), dtype=jnp.float32)
    y2 = jax.block_until_ready(scale_offset(x2, g2, b2, min_pallas_bytes=0))
    assert jnp.allclose(y2, x2 * g2 + b2, atol=1e-6, rtol=1e-6)

    # k=96 with rows divisible by 4: exercises the generalized gcd lane fold
    # (last dim becomes 384 = 3x128, lane-dense stores).
    x4 = jax.random.normal(kx4, (2, 8, 96), dtype=jnp.float32)
    y4 = jax.block_until_ready(scale_offset(x4, g2, b2, min_pallas_bytes=0))
    assert jnp.allclose(y4, x4 * g2 + b2, atol=1e-6, rtol=1e-6)

    # bf16 activations with large key_size: exercises divisor-based K tiling
    # (tile_k=1280, no ragged K block) and f32-param / bf16-output precision.
    x3 = jax.random.normal(kx3, (2, 4, 2560), dtype=jnp.bfloat16)
    g3 = 1.0 + 0.05 * jax.random.normal(kg, (2560,), dtype=jnp.float32)
    b3 = 0.05 * jax.random.normal(kb, (2560,), dtype=jnp.float32)
    y3 = jax.block_until_ready(scale_offset(x3, g3, b3, min_pallas_bytes=0))
    y3_ref = (x3.astype(jnp.float32) * g3 + b3).astype(jnp.bfloat16)
    assert y3.dtype == jnp.bfloat16
    assert jnp.allclose(
        y3.astype(jnp.float32), y3_ref.astype(jnp.float32), atol=1e-2, rtol=1e-2
    )

    # Medium shape above the XLA-fallback threshold: exercises the default
    # auto-sizing path plus the v7x megacore row split (grid (1, 2)).
    x5 = jax.random.normal(kx5, (4, 256, 512), dtype=jnp.float32)
    g5 = 1.0 + 0.05 * jax.random.normal(kg, (512,), dtype=jnp.float32)
    b5 = 0.05 * jax.random.normal(kb, (512,), dtype=jnp.float32)
    y5 = jax.block_until_ready(scale_offset(x5, g5, b5))
    assert jnp.allclose(y5, x5 * g5 + b5, atol=1e-6, rtol=1e-6)

    print("KERNEL_OK")
</pallas_src>

<mosaic_0001>
module attributes {stable_mosaic.version = 11 : i64} {
  func.func @_scale_offset_kernel(%arg0: i32, %arg1: i32, %arg2: memref<4x128xf32, #tpu.memory_space<vmem>>, %arg3: memref<1x128xf32, #tpu.memory_space<vmem>>, %arg4: memref<1x128xf32, #tpu.memory_space<vmem>>, %arg5: memref<4x128xf32, #tpu.memory_space<vmem>>) attributes {dimension_semantics = [#tpu.dimension_semantics<parallel>, #tpu.dimension_semantics<parallel>], iteration_bounds = array<i64: 1, 1>, scalar_prefetch = 0 : i64, scratch_operands = 0 : i64, tpu.core_type = #tpu.core_type<tc>, window_params = [{transform_indices = @transform_0, window_bounds = array<i64: 4, 128>}, {transform_indices = @transform_1, window_bounds = array<i64: 1, 128>}, {transform_indices = @transform_2, window_bounds = array<i64: 1, 128>}, {transform_indices = @transform_3, window_bounds = array<i64: 4, 128>}]} {
    %c0 = arith.constant 0 : index
    %c0_0 = arith.constant 0 : index
    %0 = vector.load %arg2[%c0, %c0_0] : memref<4x128xf32, #tpu.memory_space<vmem>>, vector<4x128xf32>
    %c0_1 = arith.constant 0 : index
    %c0_2 = arith.constant 0 : index
    %1 = vector.load %arg3[%c0_1, %c0_2] : memref<1x128xf32, #tpu.memory_space<vmem>>, vector<1x128xf32>
    %2 = vector.broadcast %1 : vector<1x128xf32> to vector<4x128xf32>
    %3 = arith.mulf %0, %2 : vector<4x128xf32>
    %c0_3 = arith.constant 0 : index
    %c0_4 = arith.constant 0 : index
    %4 = vector.load %arg4[%c0_3, %c0_4] : memref<1x128xf32, #tpu.memory_space<vmem>>, vector<1x128xf32>
    %5 = vector.broadcast %4 : vector<1x128xf32> to vector<4x128xf32>
    %6 = arith.addf %3, %5 : vector<4x128xf32>
    %c0_5 = arith.constant 0 : index
    %c0_6 = arith.constant 0 : index
    %7 = vector.load %arg5[%c0_5, %c0_6] : memref<4x128xf32, #tpu.memory_space<vmem>>, vector<4x128xf32>
    tpu.vector_store %arg5[%c0_5, %c0_6], %6 {strides = array<i32>} : memref<4x128xf32, #tpu.memory_space<vmem>>, vector<4x128xf32>,
    return
  }
  func.func @transform_0(%arg0: i32, %arg1: i32) -> (i32, i32) {
    %c0_i32 = arith.constant 0 : i32
    return %arg1, %arg0 : i32, i32
  }
  func.func @transform_1(%arg0: i32, %arg1: i32) -> (i32, i32) {
    %c0_i32 = arith.constant 0 : i32
    %c0_i32_0 = arith.constant 0 : i32
    return %c0_i32, %arg0 : i32, i32
  }
  func.func @transform_2(%arg0: i32, %arg1: i32) -> (i32, i32) {
    %c0_i32 = arith.constant 0 : i32
    %c0_i32_0 = arith.constant 0 : i32
    return %c0_i32, %arg0 : i32, i32
  }
  func.func @transform_3(%arg0: i32, %arg1: i32) -> (i32, i32) {
    %c0_i32 = arith.constant 0 : i32
    return %arg1, %arg0 : i32, i32
  }
}

</mosaic_0001>

<bundles_post_ra>
// kernel: tpu_custom_call.1
= control target key start
LH: loop header
LB: loop body
LE: loop exit
PB: predicated region body
PF: predicated region fallthrough
CT: control target
= control target key end

     0   :  { %8 = vsyncpa [#allocation3], 0  ;;  %s142_s0 = inlined_call_operand.hbm [shape: f32[4,128], index: 0, kind: input, shape index: {}]   ;;  %s143_s1 = inlined_call_operand.vmem [shape: f32[1,128], index: 1, kind: input, shape index: {}]   ;;  %s144_s2 = inlined_call_operand.vmem [shape: f32[1,128], index: 2, kind: input, shape index: {}]   ;;  %s145_s3 = inlined_call_operand.hbm [shape: f32[4,128], index: 3, kind: output, shape index: {}]  }
   0x1   :  { %9 = vsyncpa [#allocation4], 0  ;;  %s108_s12 = smov [#allocation2]  }
   0x2   :  { %s16_s13 = sshll.u32 %s108_s12, 4  ;;  %s17_s13 = int_to_ptr.vmem [resolvable:$true] %s16_s13 }
   0x3   :  { %s72_s14 = scalar_lea.vmem %s17_s13, 64  ;;  %p77_p1 = scmp.lt.s32.totalorder %s17_s13, %s17_s13 }
   0x4   :  { %p73_p0 = scmp.ne.s32.totalorder %s17_s13, %s72_s14  ;;  %p78_p2 = scmp.lt.s32.totalorder %s72_s14, %s72_s14 }
   0x6   :  { %p79_p3 = por %p78_p2, %p77_p1 }
   0x8   :  { %p80_p4 = pnand %p79_p3, %p73_p0 }
   0xa   :  { %83 = shalt.err (!%p80_p4)
}
   0xb   :  { %19 = dma.hbm_to_vmem [thread:$0]  %s142_s0, 64, %s17_s13, [#allocation3]  }
   0xc   :  { %104 = dma.done.wait [#allocation3], 64  }
   0xd   :  { %105 = vsyncadd [#allocation3], 4294967232  ;;  %s109_s17 = smov [#allocation5]   ;;  %v27_v0 = vld [vmem:[#allocation2] sm:$0xf] }
   0xe   :  { %s51_s18 = sshll.u32 %s109_s17, 4  ;;  %v60_v1 = vld [vmem:[%s143_s1] ss:$0 sm:$0xff]  ;;  %s52_s18 = int_to_ptr.vmem [resolvable:$true] %s51_s18 }
   0xf   :  { %v61_v2 = vld [vmem:[%s144_s2] ss:$0 sm:$0xff]  ;;  %v35_v3 = vmul.f32 %v60_v1, %v27_v0  ;;  %s84_s23 = scalar_lea.vmem %s52_s18, 64  ;;  %p89_p6 = scmp.lt.s32.totalorder %s52_s18, %s52_s18 }
  0x10   :  { %p85_p5 = scmp.ne.s32.totalorder %s52_s18, %s84_s23  ;;  %p90_p7 = scmp.lt.s32.totalorder %s84_s23, %s84_s23 }
  0x11   :  { %v43_v4 = vadd.f32 %v61_v2, %v35_v3 }
  0x12   :  { %p91_p8 = por %p90_p7, %p89_p6 }
  0x13   :  { %44 = vst [vmem:[#allocation5] sm:$0xf] %v43_v4 }
  0x14   :  { %p92_p9 = pnand %p91_p8, %p85_p5 }
  0x16   :  { %95 = shalt.err (!%p92_p9)
}
  0x17   :  { %54 = dma.vmem_to_hbm [thread:$0]  %s52_s18, 64, %s145_s3, [#allocation4]  }
  0x18   :  { %106 = dma.done.wait [#allocation4], 64  }
  0x19   :  { %107 = vsyncadd [#allocation4], 4294967232 }
  0x1a   :  { %58 = vsyncpa [#allocation3], 1 }
  0x1b   :  { %59 = vsyncpa [#allocation4], 1 }

</bundles_post_ra>
